<compile_context>
chip_gen: v6e
topology: v6e:2x2x1
jax: 0.10.0
libtpu: 0.0.40
codegen_flags: <defaults>
</compile_context>

<pallas_src>
import functools

import jax
import jax.numpy as jnp
from jax.experimental import pallas as pl
from jax.experimental.pallas import tpu as pltpu


F_IN = 25          # 5 (primary) + 20 (others)
F_PAD = 32         # fused input lane-padded width
H12 = 128          # fused fc1+fc2 output width (= fc3 input)
H3 = 256           # fc3 output width
N_LANE = 128       # lane-dense padded action width (full-vreg stores)


def _round_up(x, m):
    return (x + m - 1) // m * m


def _cdiv(a, b):
    return (a + b - 1) // b


# --------------------------------------------------------------------------
# Kernel: fused fc1+fc2 (block-diag weight) -> relu -> fc3 -> relu -> fc4.
# bf16 matmul operands, f32 accumulation; bias add / ReLU in f32; bf16 store.
# --------------------------------------------------------------------------
def qnet_kernel(x_ref, w12_ref, b12_ref, w3_ref, b3_ref, w4_ref, b4_ref,
                out_ref):
    h12 = jnp.dot(x_ref[...], w12_ref[...], preferred_element_type=jnp.float32)
    h12 = jnp.maximum(h12 + b12_ref[...], 0.0)

    h3 = jnp.dot(h12.astype(jnp.bfloat16), w3_ref[...],
                 preferred_element_type=jnp.float32)
    h3 = jnp.maximum(h3 + b3_ref[...], 0.0)

    out_ref[...] = (
        jnp.dot(h3.astype(jnp.bfloat16), w4_ref[...],
                preferred_element_type=jnp.float32)
        + b4_ref[...]).astype(out_ref.dtype)


# --------------------------------------------------------------------------
# One-time parameter preparation (hoisted out of the per-call forward).
# --------------------------------------------------------------------------
def prepare_params(params):
    """Builds the fused/padded bf16 weights once. Returns (prepped, action_size)."""
    w1, b1, w2, b2, w3, b3, w4, b4 = params
    action_size = int(w4.shape[1])
    n_pad = _round_up(max(action_size, N_LANE), N_LANE)

    # Block-diagonal fused fc1+fc2 weight: [[W1, 0], [0, W2]] -> (32, 128).
    w12 = jnp.zeros((F_PAD, H12), jnp.float32)
    w12 = w12.at[:5, :64].set(w1)
    w12 = w12.at[5:25, 64:].set(w2)
    b12 = jnp.concatenate([b1, b2]).reshape(1, H12).astype(jnp.float32)

    # Lane-dense fc4: zero-pad output columns to a multiple of 128.
    w4p = jnp.zeros((H3, n_pad), jnp.float32).at[:, :action_size].set(w4)
    b4p = jnp.zeros((1, n_pad), jnp.float32).at[:, :action_size].set(b4)

    prepped = dict(
        w12=w12.astype(jnp.bfloat16),
        b12=b12,
        w3=jnp.asarray(w3, jnp.float32).astype(jnp.bfloat16),
        b3=jnp.asarray(b3, jnp.float32).reshape(1, H3),
        w4=w4p.astype(jnp.bfloat16),
        b4=b4p,
    )
    prepped = jax.tree_util.tree_map(jax.device_put, prepped)
    return prepped, action_size


# --------------------------------------------------------------------------
# Forward wrapper.
# --------------------------------------------------------------------------
@functools.partial(
    jax.jit,
    static_argnames=("action_size", "tm", "core_parallel", "return_padded"))
def qnet_forward(primary_car, others, prepped, *, action_size, tm=1024,
                 core_parallel=False, return_padded=False):
    """primary_car: (B, 1, 5) or (B, 5); others: (B, 1, 20) or (B, 20).

    Returns (B, action_size) f32  == torch.squeeze(fc4(...), 1), or the raw
    padded (B_pad, 128) bf16 buffer when return_padded=True (padded action
    columns are exact zeros - restrict argmax etc. to [:action_size]).
    """
    B = primary_car.shape[0]
    p2 = primary_car.reshape(B, 5).astype(jnp.float32)
    o2 = others.reshape(B, 20).astype(jnp.float32)

    # Fused, lane-padded input: (B, 25) -> (B_pad, 32) bf16 (fuses under jit).
    x = jnp.concatenate([p2, o2], axis=-1)                  # (B, 25)
    x = jnp.pad(x, ((0, 0), (0, F_PAD - F_IN)))             # (B, 32)

    # Batch tiling: TM multiple of 16 (bf16 sublane packing); derive TM from
    # the tile count so B_pad never overshoots B by ~a whole tile-cap.
    B16 = _round_up(B, 16)
    num_tiles = max(1, _cdiv(B16, tm))
    TM = _round_up(_cdiv(B16, num_tiles), 16)
    B_pad = num_tiles * TM
    if B_pad != B:
        x = jnp.pad(x, ((0, B_pad - B), (0, 0)))
    x = x.astype(jnp.bfloat16)

    n_pad = prepped["w4"].shape[1]

    sem = pltpu.CORE_PARALLEL if core_parallel else pltpu.PARALLEL

    out = pl.pallas_call(
        qnet_kernel,
        out_shape=jax.ShapeDtypeStruct((B_pad, n_pad), jnp.bfloat16),
        grid=(num_tiles,),
        in_specs=[
            pl.BlockSpec((TM, F_PAD), lambda i: (i, 0)),    # x tile
            pl.BlockSpec((F_PAD, H12), lambda i: (0, 0)),   # w12 (resident)
            pl.BlockSpec((1, H12), lambda i: (0, 0)),       # b12
            pl.BlockSpec((H12, H3), lambda i: (0, 0)),      # w3
            pl.BlockSpec((1, H3), lambda i: (0, 0)),        # b3
            pl.BlockSpec((H3, n_pad), lambda i: (0, 0)),    # w4 (padded)
            pl.BlockSpec((1, n_pad), lambda i: (0, 0)),     # b4 (padded)
        ],
        out_specs=pl.BlockSpec((TM, n_pad), lambda i: (i, 0)),
        compiler_params=pltpu.CompilerParams(
            dimension_semantics=(sem,)),
    )(x, prepped["w12"], prepped["b12"], prepped["w3"], prepped["b3"],
      prepped["w4"], prepped["b4"])

    if return_padded:
        return out
    # Tiny slice (reads only B x action_size bf16) + cast back to f32.
    return out[:B, :action_size].astype(jnp.float32)


# --------------------------------------------------------------------------
# Init + pure-JAX reference for validation.
# --------------------------------------------------------------------------
def init_params(key, action_size):
    """Deterministic init mimicking torch.nn.Linear default (U[-1/sqrt(fan_in), +])."""
    def linear(k, fan_in, fan_out):
        kw, kb = jax.random.split(k)
        bound = 1.0 / jnp.sqrt(jnp.float32(fan_in))
        # Stored as (fan_in, fan_out) so the kernel does x @ W (== x @ W_torch.T).
        w = jax.random.uniform(kw, (fan_in, fan_out), jnp.float32, -bound, bound)
        b = jax.random.uniform(kb, (fan_out,), jnp.float32, -bound, bound)
        return w, b

    k1, k2, k3, k4 = jax.random.split(key, 4)
    w1, b1 = linear(k1, 5, 64)
    w2, b2 = linear(k2, 20, 64)
    w3, b3 = linear(k3, 128, 256)
    w4, b4 = linear(k4, 256, action_size)
    return (w1, b1, w2, b2, w3, b3, w4, b4)


def qnet_reference(primary_car, others, params):
    """Plain-JAX f32 reference of the PyTorch forward."""
    w1, b1, w2, b2, w3, b3, w4, b4 = params
    x0 = jax.nn.relu(primary_car @ w1 + b1)
    x1 = jax.nn.relu(others @ w2 + b2)
    x = jax.nn.relu(jnp.concatenate((x0, x1), axis=-1) @ w3 + b3)
    x = x @ w4 + b4
    return jnp.squeeze(x, 1)


if __name__ == "__main__":
    key = jax.random.PRNGKey(0)
    kp, ko, kparam = jax.random.split(key, 3)

    batch = 2
    action_size = 5

    # Torch-style inputs: (B, 1, 5) and (B, 1, 20); squeeze(1) gives (B, A).
    primary_car = jax.random.normal(kp, (batch, 1, 5), jnp.float32)
    others = jax.random.normal(ko, (batch, 1, 20), jnp.float32)

    params = init_params(kparam, action_size)
    prepped, a_sz = prepare_params(params)          # one-time weight prep

    out = qnet_forward(primary_car, others, prepped, action_size=a_sz)
    out = jax.block_until_ready(out)

    ref = qnet_reference(primary_car, others, params)
    assert out.shape == (batch, action_size)
    # bf16 matmul operands + bf16 output store (f32 accumulation) -> loosened
    # tolerance vs the pure-f32 reference.
    assert jnp.allclose(out, ref, atol=5e-2, rtol=5e-2)

    print("KERNEL_OK")
</pallas_src>

<mosaic_0001>
module attributes {stable_mosaic.version = 11 : i64} {
  func.func @qnet_kernel(%arg0: i32, %arg1: memref<16x32xbf16, #tpu.memory_space<vmem>>, %arg2: memref<32x128xbf16, #tpu.memory_space<vmem>>, %arg3: memref<1x128xf32, #tpu.memory_space<vmem>>, %arg4: memref<128x256xbf16, #tpu.memory_space<vmem>>, %arg5: memref<1x256xf32, #tpu.memory_space<vmem>>, %arg6: memref<256x128xbf16, #tpu.memory_space<vmem>>, %arg7: memref<1x128xf32, #tpu.memory_space<vmem>>, %arg8: memref<16x128xbf16, #tpu.memory_space<vmem>>) attributes {dimension_semantics = [#tpu.dimension_semantics<parallel>], iteration_bounds = array<i64: 1>, scalar_prefetch = 0 : i64, scratch_operands = 0 : i64, tpu.core_type = #tpu.core_type<tc>, window_params = [{transform_indices = @transform_0, window_bounds = array<i64: 16, 32>}, {pipeline_mode = #tpu.pipeline_mode<synchronous>, transform_indices = @transform_1, window_bounds = array<i64: 32, 128>}, {pipeline_mode = #tpu.pipeline_mode<synchronous>, transform_indices = @transform_2, window_bounds = array<i64: 1, 128>}, {pipeline_mode = #tpu.pipeline_mode<synchronous>, transform_indices = @transform_3, window_bounds = array<i64: 128, 256>}, {pipeline_mode = #tpu.pipeline_mode<synchronous>, transform_indices = @transform_4, window_bounds = array<i64: 1, 256>}, {pipeline_mode = #tpu.pipeline_mode<synchronous>, transform_indices = @transform_5, window_bounds = array<i64: 256, 128>}, {pipeline_mode = #tpu.pipeline_mode<synchronous>, transform_indices = @transform_6, window_bounds = array<i64: 1, 128>}, {transform_indices = @transform_7, window_bounds = array<i64: 16, 128>}]} {
    %c0 = arith.constant 0 : index
    %c0_0 = arith.constant 0 : index
    %0 = vector.load %arg1[%c0, %c0_0] : memref<16x32xbf16, #tpu.memory_space<vmem>>, vector<16x32xbf16>
    %c0_1 = arith.constant 0 : index
    %c0_2 = arith.constant 0 : index
    %1 = vector.load %arg2[%c0_1, %c0_2] : memref<32x128xbf16, #tpu.memory_space<vmem>>, vector<32x128xbf16>
    %cst = arith.constant dense<0.000000e+00> : vector<16x128xf32>
    %2 = tpu.matmul %0, %1, %cst {dimension_numbers = #tpu.dot_dimension_numbers<[1], [0], [0], [1], [0, 0, 1, 1], [], []>} : vector<16x32xbf16>, vector<32x128xbf16>, vector<16x128xf32> -> vector<16x128xf32>
    %c0_3 = arith.constant 0 : index
    %c0_4 = arith.constant 0 : index
    %3 = vector.load %arg3[%c0_3, %c0_4] : memref<1x128xf32, #tpu.memory_space<vmem>>, vector<1x128xf32>
    %4 = vector.broadcast %3 : vector<1x128xf32> to vector<16x128xf32>
    %5 = arith.addf %2, %4 : vector<16x128xf32>
    %cst_5 = arith.constant 0.000000e+00 : f32
    %6 = vector.broadcast %cst_5 : f32 to vector<16x128xf32>
    %7 = arith.maximumf %5, %6 : vector<16x128xf32>
    %8 = arith.truncf %7 : vector<16x128xf32> to vector<16x128xbf16>
    %c0_6 = arith.constant 0 : index
    %c0_7 = arith.constant 0 : index
    %9 = vector.load %arg4[%c0_6, %c0_7] : memref<128x256xbf16, #tpu.memory_space<vmem>>, vector<128x256xbf16>
    %cst_8 = arith.constant dense<0.000000e+00> : vector<16x256xf32>
    %10 = tpu.matmul %8, %9, %cst_8 {dimension_numbers = #tpu.dot_dimension_numbers<[1], [0], [0], [1], [0, 0, 1, 1], [], []>} : vector<16x128xbf16>, vector<128x256xbf16>, vector<16x256xf32> -> vector<16x256xf32>
    %c0_9 = arith.constant 0 : index
    %c0_10 = arith.constant 0 : index
    %11 = vector.load %arg5[%c0_9, %c0_10] : memref<1x256xf32, #tpu.memory_space<vmem>>, vector<1x256xf32>
    %12 = vector.broadcast %11 : vector<1x256xf32> to vector<16x256xf32>
    %13 = arith.addf %10, %12 : vector<16x256xf32>
    %cst_11 = arith.constant 0.000000e+00 : f32
    %14 = vector.broadcast %cst_11 : f32 to vector<16x256xf32>
    %15 = arith.maximumf %13, %14 : vector<16x256xf32>
    %16 = arith.truncf %15 : vector<16x256xf32> to vector<16x256xbf16>
    %c0_12 = arith.constant 0 : index
    %c0_13 = arith.constant 0 : index
    %17 = vector.load %arg6[%c0_12, %c0_13] : memref<256x128xbf16, #tpu.memory_space<vmem>>, vector<256x128xbf16>
    %cst_14 = arith.constant dense<0.000000e+00> : vector<16x128xf32>
    %18 = tpu.matmul %16, %17, %cst_14 {dimension_numbers = #tpu.dot_dimension_numbers<[1], [0], [0], [1], [0, 0, 1, 1], [], []>} : vector<16x256xbf16>, vector<256x128xbf16>, vector<16x128xf32> -> vector<16x128xf32>
    %c0_15 = arith.constant 0 : index
    %c0_16 = arith.constant 0 : index
    %19 = vector.load %arg7[%c0_15, %c0_16] : memref<1x128xf32, #tpu.memory_space<vmem>>, vector<1x128xf32>
    %20 = vector.broadcast %19 : vector<1x128xf32> to vector<16x128xf32>
    %21 = arith.addf %18, %20 : vector<16x128xf32>
    %22 = arith.truncf %21 : vector<16x128xf32> to vector<16x128xbf16>
    %c0_17 = arith.constant 0 : index
    %c0_18 = arith.constant 0 : index
    %23 = vector.load %arg8[%c0_17, %c0_18] : memref<16x128xbf16, #tpu.memory_space<vmem>>, vector<16x128xbf16>
    tpu.vector_store %arg8[%c0_17, %c0_18], %22 {strides = array<i32>} : memref<16x128xbf16, #tpu.memory_space<vmem>>, vector<16x128xbf16>,
    return
  }
  func.func @transform_0(%arg0: i32) -> (i32, i32) {
    %c0_i32 = arith.constant 0 : i32
    %c0_i32_0 = arith.constant 0 : i32
    return %arg0, %c0_i32 : i32, i32
  }
  func.func @transform_1(%arg0: i32) -> (i32, i32) {
    %c0_i32 = arith.constant 0 : i32
    %c0_i32_0 = arith.constant 0 : i32
    %c0_i32_1 = arith.constant 0 : i32
    return %c0_i32, %c0_i32_0 : i32, i32
  }
  func.func @transform_2(%arg0: i32) -> (i32, i32) {
    %c0_i32 = arith.constant 0 : i32
    %c0_i32_0 = arith.constant 0 : i32
    %c0_i32_1 = arith.constant 0 : i32
    return %c0_i32, %c0_i32_0 : i32, i32
  }
  func.func @transform_3(%arg0: i32) -> (i32, i32) {
    %c0_i32 = arith.constant 0 : i32
    %c0_i32_0 = arith.constant 0 : i32
    %c0_i32_1 = arith.constant 0 : i32
    return %c0_i32, %c0_i32_0 : i32, i32
  }
  func.func @transform_4(%arg0: i32) -> (i32, i32) {
    %c0_i32 = arith.constant 0 : i32
    %c0_i32_0 = arith.constant 0 : i32
    %c0_i32_1 = arith.constant 0 : i32
    return %c0_i32, %c0_i32_0 : i32, i32
  }
  func.func @transform_5(%arg0: i32) -> (i32, i32) {
    %c0_i32 = arith.constant 0 : i32
    %c0_i32_0 = arith.constant 0 : i32
    %c0_i32_1 = arith.constant 0 : i32
    return %c0_i32, %c0_i32_0 : i32, i32
  }
  func.func @transform_6(%arg0: i32) -> (i32, i32) {
    %c0_i32 = arith.constant 0 : i32
    %c0_i32_0 = arith.constant 0 : i32
    %c0_i32_1 = arith.constant 0 : i32
    return %c0_i32, %c0_i32_0 : i32, i32
  }
  func.func @transform_7(%arg0: i32) -> (i32, i32) {
    %c0_i32 = arith.constant 0 : i32
    %c0_i32_0 = arith.constant 0 : i32
    return %arg0, %c0_i32 : i32, i32
  }
}

</mosaic_0001>

<bundles_post_ra>
// kernel: qnet_forward.1
= control target key start
LH: loop header
LB: loop body
LE: loop exit
PB: predicated region body
PF: predicated region fallthrough
CT: control target
= control target key end

     0   :  { %12 = vsyncpa [#allocation3], 0  ;;  %s734_s0 = inlined_call_operand.vmem [shape: bf16[16,32], index: 0, kind: input, shape index: {}]   ;;  %s735_s1 = inlined_call_operand.vmem [shape: bf16[32,128], index: 1, kind: input, shape index: {}]   ;;  %s736_s2 = inlined_call_operand.vmem [shape: f32[1,128], index: 2, kind: input, shape index: {}]   ;;  %s737_s3 = inlined_call_operand.hbm [shape: bf16[128,256], index: 3, kind: input, shape index: {}]   ;;  %s738_s4 = inlined_call_operand.vmem [shape: f32[1,256], index: 4, kind: input, shape index: {}]   ;;  %s739_s5 = inlined_call_operand.hbm [shape: bf16[256,128], index: 5, kind: input, shape index: {}]   ;;  %s740_s6 = inlined_call_operand.vmem [shape: f32[1,128], index: 6, kind: input, shape index: {}]   ;;  %s741_s7 = inlined_call_operand.vmem [shape: bf16[16,128], index: 7, kind: output, shape index: {}]  }
   0x1   :  { %13 = vsyncpa [#allocation5], 0  ;;  %s658_s24 = smov [#allocation2]  }
   0x2   :  { %s25_s25 = sshll.u32 %s658_s24, 4  ;;  %s26_s25 = int_to_ptr.vmem [resolvable:$true] %s25_s25 }
   0x3   :  { %s622_s26 = scalar_lea.vmem %s26_s25, 2048  ;;  %p627_p1 = scmp.lt.s32.totalorder %s26_s25, %s26_s25 }
   0x4   :  { %p623_p0 = scmp.ne.s32.totalorder %s26_s25, %s622_s26  ;;  %p628_p2 = scmp.lt.s32.totalorder %s622_s26, %s622_s26 }
   0x6   :  { %p629_p3 = por %p628_p2, %p627_p1 }
   0x8   :  { %p630_p4 = pnand %p629_p3, %p623_p0 }
   0xa   :  { %633 = shalt.err (!%p630_p4)
}
   0xb   :  { %s659_s27 = smov 128   ;;  %s660_s28 = smov 8  }
   0xc   :  { %31 = dma.hbm_to_vmem [thread:$0]  %s737_s3, 2048, %s26_s25, [#allocation3], %s659_s27, %s659_s27, %s660_s28  }
   0xd   :  { %s661_s8 = smov [#allocation4]  }
   0xe   :  { %s39_s9 = sshll.u32 %s661_s8, 4  ;;  %s40_s9 = int_to_ptr.vmem [resolvable:$true] %s39_s9 }
   0xf   :  { %s642_s10 = scalar_lea.vmem %s40_s9, 2048  ;;  %p647_p6 = scmp.lt.s32.totalorder %s40_s9, %s40_s9 }
  0x10   :  { %p643_p5 = scmp.ne.s32.totalorder %s40_s9, %s642_s10  ;;  %p648_p7 = scmp.lt.s32.totalorder %s642_s10, %s642_s10 }
  0x12   :  { %p649_p8 = por %p648_p7, %p647_p6 }
  0x14   :  { %p650_p9 = pnand %p649_p8, %p643_p5 }
  0x16   :  { %653 = shalt.err (!%p650_p9)
}
  0x17   :  { %s662_s11 = smov 64   ;;  %s663_s12 = smov 4  }
  0x18   :  { %45 = dma.hbm_to_vmem [thread:$0]  %s739_s5, 2048, %s40_s9, [#allocation5], %s662_s11, %s662_s11, %s663_s12  }
  0x19   :  { %654 = dma.done.wait [#allocation3], 2048  }
  0x1a   :  { %655 = vsyncadd [#allocation3], 4294965248 }
  0x1b   :  { %656 = dma.done.wait [#allocation5], 2048  }
  0x1c   :  { %657 = vsyncadd [#allocation5], 4294965248  ;;  %v664_v0 = vmov 0.0   ;;  %vm665_vm0 = vmmov 0   ;;  %v571_v1 = vld [vmem:[%s735_s1 + $0x8] sm:$0xff]   ;;  %v572_v2 = vld [vmem:[%s735_s1] sm:$0xff]   ;;  %v151_v47 = vlaneseq }
  0x1d   :  { %554 = vmatprep.subr.bf16.mxu0 %v664_v0  ;;  %558 = vmatprep.mubr.msk.bf16.mxu0 %vm665_vm0, %v664_v0  ;;  %v574_v3 = vld [vmem:[#allocation2 + $0x74] ss:$8 sps:$4 sm:$0xff]   ;;  %v576_v4 = vld [vmem:[#allocation2 + $0x70] ss:$8 sps:$4 sm:$0xff]   ;;  %v573_v5 = vld [vmem:[%s734_s0] sm:$0xff]   ;;  %vm85_vm1 = vcmask 261120  }
  0x1e   :  { %555 = vmatpush3.bf16.msra.mxu0 %v571_v1  ;;  %241 = vmatprep.subr.bf16.mxu1 %v574_v3  ;;  %v577_v6 = vld [vmem:[#allocation2 + $0x64] ss:$8 sps:$4 sm:$0xff]   ;;  %v579_v7 = vld [vmem:[#allocation2 + $0x60] ss:$8 sps:$4 sm:$0xff]   ;;  %v580_v8 = vld [vmem:[#allocation2 + $0x54] ss:$8 sps:$4 sm:$0xff]  }
  0x1f   :  { %556 = vmatprep.subr.bf16.mxu0 %v664_v0  ;;  %242 = vmatpush1.bf16.msra.mxu1 %v576_v4  ;;  %v582_v9 = vld [vmem:[#allocation2 + $0x50] ss:$8 sps:$4 sm:$0xff]   ;;  %v583_v10 = vld [vmem:[#allocation2 + $0x44] ss:$8 sps:$4 sm:$0xff]   ;;  %v585_v11 = vld [vmem:[#allocation2 + $0x40] ss:$8 sps:$4 sm:$0xff]  }
  0x20   :  { %243 = vmatprep.subr.bf16.mxu1 %v577_v6  ;;  %v586_v12 = vld [vmem:[#allocation2 + $0x34] ss:$8 sps:$4 sm:$0xff]   ;;  %v588_v13 = vld [vmem:[#allocation2 + $0x30] ss:$8 sps:$4 sm:$0xff]   ;;  %v589_v14 = vld [vmem:[#allocation2 + $0x24] ss:$8 sps:$4 sm:$0xff]  }
  0x21   :  { %v591_v15 = vld [vmem:[#allocation2 + $0x20] ss:$8 sps:$4 sm:$0xff]   ;;  %v592_v16 = vld [vmem:[#allocation2 + $0x14] ss:$8 sps:$4 sm:$0xff]   ;;  %v594_v17 = vld [vmem:[#allocation2 + $0x10] ss:$8 sps:$4 sm:$0xff]  }
  0x22   :  { %557 = vmatpush3.bf16.msra.mxu0 %v572_v2  ;;  %v595_v18 = vld [vmem:[#allocation2 + $0x4] ss:$8 sps:$4 sm:$0xff]   ;;  %v597_v19 = vld [vmem:[#allocation2] ss:$8 sps:$4 sm:$0xff]   ;;  %v666_v20 = vmov 0   ;;  %v598_v21 = vld [vmem:[#allocation4 + $0x78] sm:$0xff]  }
  0x23   :  { %244 = vmatpush1.bf16.msra.mxu1 %v579_v7  ;;  %273 = vmatprep.mubr.bf16.mxu1 %v666_v20  ;;  %v599_v22 = vld [vmem:[#allocation4 + $0x38] sm:$0xff]   ;;  %v600_v23 = vld [vmem:[#allocation4 + $0x70] sm:$0xff]   ;;  %v602_v25 = vld [vmem:[#allocation4 + $0x68] sm:$0xff]   ;;  %v152_v48 = vshrl.u32 %v151_v47, 7 }
  0x24   :  { %245 = vmatprep.subr.bf16.mxu1 %v580_v8  ;;  %532 = vmatprep.subr.bf16.mxu0 %v598_v21  ;;  %v601_v24 = vld [vmem:[#allocation4 + $0x30] sm:$0xff]   ;;  %v603_v26 = vld [vmem:[#allocation4 + $0x28] sm:$0xff]   ;;  %v604_v27 = vld [vmem:[#allocation4 + $0x60] sm:$0xff]  }
  0x25   :  { %559 = vmatmul.mubr.msk.bf16.vlgmr.msra.gmra.mxu0 %vm85_vm1, %v573_v5  ;;  %v605_v28 = vld [vmem:[#allocation4 + $0x20] sm:$0xff]   ;;  %v606_v29 = vld [vmem:[#allocation4 + $0x58] sm:$0xff]   ;;  %v608_v41 = vld [vmem:[#allocation4 + $0x50] sm:$0xff]   ;;  %v157_v49 = vsub.s32 1, %v152_v48  ;;  %v153_v50 = vsub.s32 0, %v152_v48 }
  0x26   :  { %533 = vmatpush3.bf16.msra.mxu0 %v599_v22  ;;  %v607_v30 = vld [vmem:[#allocation4 + $0x18] sm:$0xff]   ;;  %v482_v31 = vld [vmem:[%s736_s2] ss:$0 sm:$0xff]  ;;  %v609_v42 = vld [vmem:[#allocation4 + $0x10] sm:$0xff]  }
  0x27   :  { %246 = vmatpush1.bf16.msra.mxu1 %v582_v9  ;;  %534 = vmatprep.subr.bf16.mxu0 %v600_v23  ;;  %v610_v43 = vld [vmem:[#allocation4 + $0x48] sm:$0xff]   ;;  %v612_v45 = vld [vmem:[#allocation4 + $0x40] sm:$0xff]  }
  0x28   :  { %247 = vmatprep.subr.bf16.mxu1 %v583_v10  ;;  %v611_v44 = vld [vmem:[#allocation4 + $0x8] sm:$0xff]   ;;  %v613_v46 = vld [vmem:[#allocation4] sm:$0xff]  }
  0x29   :  { %v149_v51 = vld [vmem:[%s738_s4] sm:$0x3] }
  0x2a   :  { %535 = vmatpush3.bf16.msra.mxu0 %v601_v24  ;;  %v158_v53 = vrot.slane %v149_v51, %v157_v49  ;;  %v154_v54 = vrot.slane %v149_v51, %v153_v50  ;;  %v503_v8 = vld [vmem:[%s740_s6] ss:$0 sm:$0xff] }
  0x2b   :  { %248 = vmatpush1.bf16.msra.mxu1 %v585_v11  ;;  %536 = vmatprep.subr.bf16.mxu0 %v602_v25 }
  0x2c   :  { %249 = vmatprep.subr.bf16.mxu1 %v586_v12 }
  0x2e   :  { %537 = vmatpush3.bf16.msra.mxu0 %v603_v26 }
  0x2f   :  { %250 = vmatpush1.bf16.msra.mxu1 %v588_v13  ;;  %538 = vmatprep.subr.bf16.mxu0 %v604_v27 }
  0x30   :  { %251 = vmatprep.subr.bf16.mxu1 %v589_v14 }
  0x32   :  { %539 = vmatpush3.bf16.msra.mxu0 %v605_v28 }
  0x33   :  { %252 = vmatpush1.bf16.msra.mxu1 %v591_v15  ;;  %540 = vmatprep.subr.bf16.mxu0 %v606_v29 }
  0x34   :  { %253 = vmatprep.subr.bf16.mxu1 %v592_v16 }
  0x36   :  { %541 = vmatpush3.bf16.msra.mxu0 %v607_v30 }
  0x37   :  { %254 = vmatpush1.bf16.msra.mxu1 %v594_v17  ;;  %542 = vmatprep.subr.bf16.mxu0 %v608_v41 }
  0x38   :  { %255 = vmatprep.subr.bf16.mxu1 %v595_v18 }
  0x3a   :  { %543 = vmatpush3.bf16.msra.mxu0 %v609_v42 }
  0x3b   :  { %256 = vmatpush1.bf16.msra.mxu1 %v597_v19  ;;  %544 = vmatprep.subr.bf16.mxu0 %v610_v43 }
  0x3e   :  { %545 = vmatpush3.bf16.msra.mxu0 %v611_v44 }
  0x3f   :  { %546 = vmatprep.subr.bf16.mxu0 %v612_v45 }
  0x42   :  { %547 = vmatpush3.bf16.msra.mxu0 %v613_v46 }
  0xe5   :  { %v123_v32 = vpop.f32.mrf.mxu0 }
  0xe6   :  { %v124_v34 = vadd.f32 %v482_v31, %v123_v32 }
  0xe7   :  { %v560_v33 = vpop.f32.mrf.mxu0 }
  0xe8   :  { %v130_v38 = vmax.f32 %v124_v34, 0.0 }
  0xe9   :  { %v126_v35 = vpop.f32.mrf.mxu0 }
  0xea   :  { %v127_v36 = vadd.f32 %v482_v31, %v126_v35 }
  0xeb   :  { %v561_v37 = vpop.f32.mrf.mxu0 }
  0xec   :  { %v131_v39 = vmax.f32 %v127_v36, 0.0 }
  0xee   :  { %v132_v40 = vpack.c.bf16 %v131_v39, %v130_v38 }
  0xf0   :  { %274 = vmatmul.mubr.bf16.vlgmr.msra.gmra.mxu1 %v132_v40 }
 0x1b0   :  { %v275_v52 = vpop.f32.mrf.mxu1 }
 0x1b1   :  { %v276_v59 = vadd.f32 %v275_v52, %v154_v54 }
 0x1b2   :  { %v277_v55 = vpop.f32.mrf.mxu1 }
 0x1b3   :  { %v278_v57 = vadd.f32 %v277_v55, %v158_v53  ;;  %v284_v1 = vmax.f32 %v276_v59, 0.0 }
 0x1b4   :  { %v279_v56 = vpop.f32.mrf.mxu1 }
 0x1b5   :  { %v280_v58 = vadd.f32 %v279_v56, %v154_v54  ;;  %v285_v63 = vmax.f32 %v278_v57, 0.0 }
 0x1b6   :  { %v281_v60 = vpop.f32.mrf.mxu1 }
 0x1b7   :  { %v282_v61 = vadd.f32 %v281_v60, %v158_v53  ;;  %v286_v62 = vmax.f32 %v280_v58, 0.0 }
 0x1b9   :  { %v287_v0 = vmax.f32 %v282_v61, 0.0  ;;  %v288_v3 = vpack.c.bf16 %v286_v62, %v284_v1 }
 0x1bb   :  { %v289_v2 = vpack.c.bf16 %v287_v0, %v285_v63 }
 0x1bd   :  { %457 = vmatprep.mubr.bf16.mxu0 %v289_v2 }
 0x1be   :  { %458 = vmatmul.mubr.bf16.vlgmr.msra.gmra.mxu0 %v288_v3 }
 0x27e   :  { %v548_v4 = vpop.f32.mrf.mxu0 }
 0x280   :  { %v549_v5 = vpop.f32.mrf.mxu0 }
 0x281   :  { %v550_v7 = vadd.f32 %v549_v5, %v548_v4 }
 0x282   :  { %v551_v6 = vpop.f32.mrf.mxu0 }
 0x283   :  { %v460_v11 = vadd.f32 %v550_v7, %v503_v8 }
 0x284   :  { %v552_v9 = vpop.f32.mrf.mxu0 }
 0x285   :  { %v553_v10 = vadd.f32 %v552_v9, %v551_v6 }
 0x287   :  { %v463_v12 = vadd.f32 %v553_v10, %v503_v8 }
 0x289   :  { %v527_v13 = vpack.c.bf16 %v463_v12, %v460_v11 }
 0x28b   :  { %528 = vst [vmem:[%s741_s7] sm:$0xff] %v527_v13  }
 0x28c   :  { %480 = vsyncpa [#allocation3], 1 }
 0x28d   :  { %481 = vsyncpa [#allocation5], 1 }

</bundles_post_ra>
